<compile_context>
chip_gen: v7x
topology: tpu7x:2x2x1
jax: 0.10.0
libtpu: 0.0.40
codegen_flags: <defaults>
</compile_context>

<pallas_src>
import jax
import jax.numpy as jnp
from jax.experimental import pallas as pl
from jax.experimental.pallas import tpu as pltpu

_LANE = 128


def _relu_sigmoid_kernel(x_ref, o_ref):
    x = x_ref[...]
    y = jnp.maximum(x, 0)                                 # ReLU (VPU)
    o_ref[...] = jax.nn.sigmoid(y).astype(o_ref.dtype)    # Sigmoid (EUP)


def _round_up(a: int, m: int) -> int:
    return ((a + m - 1) // m) * m


def relu_sigmoid(x: jax.Array, *, tile_rows: int = 4096) -> jax.Array:
    """sigmoid(relu(x)) for an arbitrary-shaped float array (NCHW or anything)."""
    orig_shape = x.shape
    dtype = x.dtype
    n = x.size
    if n == 0:
        return x

    # Keep tile_rows a multiple of 32: legal & fully packed for f32/bf16/int8.
    tile_rows = max(32, _round_up(tile_rows, 32))

    needs_pad = (n % _LANE) != 0
    if needs_pad:
        # Pad only to a single 128-lane row, NOT to a full tile.
        n_pad = _round_up(n, _LANE)
        x_flat = jnp.pad(jnp.reshape(x, (-1,)), (0, n_pad - n))
    else:
        # Fast path: contiguous reshape, no pad, no trailing slice.
        n_pad = n
        x_flat = jnp.reshape(x, (-1,))

    rows = n_pad // _LANE
    x2d = jnp.reshape(x_flat, (rows, _LANE))

    # Clamp the block to the (sublane-rounded) array; Pallas clips the ragged
    # final block's writeback, so grid = cdiv is safe.
    block_rows = min(tile_rows, _round_up(rows, 32))
    grid = (pl.cdiv(rows, block_rows),)

    out2d = pl.pallas_call(
        _relu_sigmoid_kernel,
        out_shape=jax.ShapeDtypeStruct((rows, _LANE), dtype),
        grid_spec=pltpu.PrefetchScalarGridSpec(
            num_scalar_prefetch=0,
            grid=grid,
            in_specs=[pl.BlockSpec((block_rows, _LANE), lambda i: (i, 0))],
            out_specs=pl.BlockSpec((block_rows, _LANE), lambda i: (i, 0)),
        ),
        compiler_params=pltpu.CompilerParams(
            dimension_semantics=("parallel",),
        ),
    )(x2d)

    out_flat = jnp.reshape(out2d, (-1,))
    if needs_pad:
        out_flat = out_flat[:n]
    return jnp.reshape(out_flat, orig_shape)


if __name__ == "__main__":
    key = jax.random.PRNGKey(0)
    # Small NCHW input consistent with the module's forward: (batch=2, C=4, 16, 16)
    x = jax.random.normal(key, (2, 4, 16, 16), dtype=jnp.float32)

    out = jax.block_until_ready(relu_sigmoid(x))

    # Reference check in plain JAX
    ref = jax.nn.sigmoid(jnp.maximum(x, 0.0))
    assert out.shape == x.shape and out.dtype == x.dtype
    assert jnp.allclose(out, ref, atol=1e-6), "mismatch vs reference"

    print("KERNEL_OK")
</pallas_src>

<mosaic_0001>
module attributes {stable_mosaic.version = 11 : i64} {
  func.func @_relu_sigmoid_kernel(%arg0: i32, %arg1: memref<32x128xf32, #tpu.memory_space<vmem>>, %arg2: memref<32x128xf32, #tpu.memory_space<vmem>>) attributes {dimension_semantics = [#tpu.dimension_semantics<parallel>], iteration_bounds = array<i64: 1>, scalar_prefetch = 0 : i64, scratch_operands = 0 : i64, tpu.core_type = #tpu.core_type<tc>, window_params = [{transform_indices = @transform_0, window_bounds = array<i64: 32, 128>}, {transform_indices = @transform_1, window_bounds = array<i64: 32, 128>}]} {
    %c0 = arith.constant 0 : index
    %c0_0 = arith.constant 0 : index
    %0 = vector.load %arg1[%c0, %c0_0] : memref<32x128xf32, #tpu.memory_space<vmem>>, vector<32x128xf32>
    %cst = arith.constant 0.000000e+00 : f32
    %1 = vector.broadcast %cst : f32 to vector<32x128xf32>
    %2 = arith.maximumf %0, %1 : vector<32x128xf32>
    %3 = arith.negf %2 : vector<32x128xf32>
    %4 = math.exp %3 : vector<32x128xf32>
    %cst_1 = arith.constant 1.000000e+00 : f32
    %5 = vector.broadcast %cst_1 : f32 to vector<32x128xf32>
    %6 = arith.addf %5, %4 : vector<32x128xf32>
    %7 = arith.divf %5, %6 : vector<32x128xf32>
    %c0_2 = arith.constant 0 : index
    %c0_3 = arith.constant 0 : index
    %8 = vector.load %arg2[%c0_2, %c0_3] : memref<32x128xf32, #tpu.memory_space<vmem>>, vector<32x128xf32>
    tpu.vector_store %arg2[%c0_2, %c0_3], %7 {strides = array<i32>} : memref<32x128xf32, #tpu.memory_space<vmem>>, vector<32x128xf32>,
    return
  }
  func.func @transform_0(%arg0: i32) -> (i32, i32) {
    %c0_i32 = arith.constant 0 : i32
    %c0_i32_0 = arith.constant 0 : i32
    return %arg0, %c0_i32 : i32, i32
  }
  func.func @transform_1(%arg0: i32) -> (i32, i32) {
    %c0_i32 = arith.constant 0 : i32
    %c0_i32_0 = arith.constant 0 : i32
    return %arg0, %c0_i32 : i32, i32
  }
}

</mosaic_0001>

<bundles_post_ra>
// kernel: tpu_custom_call.1
= control target key start
LH: loop header
LB: loop body
LE: loop exit
PB: predicated region body
PF: predicated region fallthrough
CT: control target
= control target key end

     0   :  { %6 = vsyncpa [#allocation3], 0  ;;  %s192_s0 = inlined_call_operand.hbm [shape: f32[16,128], index: 0, kind: input, shape index: {}]   ;;  %s193_s1 = inlined_call_operand.hbm [shape: f32[16,128], index: 1, kind: output, shape index: {}]  }
   0x1   :  { %7 = vsyncpa [#allocation4], 0 }
   0x2   :  { %12 = vsyncadd [#allocation3], 256  ;;  %s148_s6 = smov [#allocation2]   ;;  %s100_s10 = scalar_lea.hbm %s192_s0, 256 }
   0x3   :  { %s13_s7 = sshll.u32 %s148_s6, 4  ;;  %p101_p0 = scmp.ne.s32.totalorder %s192_s0, %s100_s10  ;;  %s14_s7 = int_to_ptr.vmem [resolvable:$true] %s13_s7 }
   0x4   :  { %p104_p1 = scmp.lt.u32.totalorder %s100_s10, %s192_s0 }
   0x6   :  { %p106_p2 = pnand %p104_p1, %p101_p0 }
   0x8   :  { %109 = shalt.err (!%p106_p2)
}
   0x9   :  { %s110_s15 = scalar_lea.vmem %s14_s7, 256  ;;  %s114_s16 = scalar_lea.vmem %s14_s7, 512 }
   0xa   :  { %p111_p3 = scmp.ne.s32.totalorder %s14_s7, %s110_s15  ;;  %p115_p4 = scmp.lt.s32.totalorder %s14_s7, %s14_s7 }
   0xb   :  { %p116_p5 = scmp.lt.s32.totalorder %s114_s16, %s110_s15 }
   0xd   :  { %p117_p6 = por %p116_p5, %p115_p4 }
   0xf   :  { %p118_p7 = pnand %p117_p6, %p111_p3 }
  0x11   :  { %121 = shalt.err (!%p118_p7)
}
  0x12   :  { %s149_s17 = smov 128   ;;  %s150_s18 = smov 8  }
  0x13   :  { %19 = dma.hbm_to_vmem [thread:$0]  %s192_s0, 256, %s14_s7, [#allocation3], %s149_s17, %s149_s17, %s150_s18  }
  0x14   :  { %144 = dma.done.wait [#allocation3], 512  }
  0x15   :  { %145 = vsyncadd [#allocation3], 4294966784  ;;  %v23_v0 = vld [vmem:[#allocation2] sm:$0xff]  ;;  %v24_v1 = vld [vmem:[#allocation2 + $0x8] sm:$0xff] }
  0x16   :  { %v25_v2 = vld [vmem:[#allocation2 + $0x10] sm:$0xff]  ;;  %v27_v3 = vmax.f32 %v23_v0, 0.0  ;;  %v28_v4 = vmax.f32 %v24_v1, 0.0  ;;  %v26_v6 = vld [vmem:[#allocation2 + $0x18] sm:$0xff] }
  0x17   :  { %v29_v5 = vmax.f32 %v25_v2, 0.0  ;;  %v30_v7 = vmax.f32 %v26_v6, 0.0 }
  0x18   :  { %v76_v8 = vmul.f32 -1.442695, %v27_v3  ;;  %v77_v9 = vmul.f32 -1.442695, %v28_v4 }
  0x19   :  { %v78_v10 = vmul.f32 -1.442695, %v29_v5  ;;  %v79_v11 = vmul.f32 -1.442695, %v30_v7 }
  0x1a   :  { %84 = vpow2.f32 %v76_v8 }
  0x1b   :  { %86 = vpow2.f32 %v77_v9 }
  0x1c   :  { %88 = vpow2.f32 %v78_v10 }
  0x1d   :  { %90 = vpow2.f32 %v79_v11 }
  0x24   :  { %v85_v12 = vpop.eup %84 }
  0x25   :  { %v87_v13 = vpop.eup %86  ;;  %v43_v14 = vadd.f32 1.0, %v85_v12 }
  0x26   :  { %v89_v15 = vpop.eup %88  ;;  %v44_v16 = vadd.f32 1.0, %v87_v13 }
  0x27   :  { %v91_v17 = vpop.eup %90  ;;  %92 = vrcp.f32 %v43_v14  ;;  %v45_v18 = vadd.f32 1.0, %v89_v15 }
  0x28   :  { %94 = vrcp.f32 %v44_v16  ;;  %v46_v19 = vadd.f32 1.0, %v91_v17 }
  0x29   :  { %96 = vrcp.f32 %v45_v18 }
  0x2a   :  { %98 = vrcp.f32 %v46_v19 }
  0x31   :  { %v93_v20 = vpop.eup %92 }
  0x32   :  { %v95_v21 = vpop.eup %94  ;;  %55 = vst [vmem:[#allocation5] sm:$0xff] %v93_v20 }
  0x33   :  { %v97_v22 = vpop.eup %96  ;;  %56 = vst [vmem:[#allocation5 + $0x8] sm:$0xff] %v95_v21 }
  0x34   :  { %v99_v23 = vpop.eup %98  ;;  %57 = vst [vmem:[#allocation5 + $0x10] sm:$0xff] %v97_v22 }
  0x35   :  { %58 = vst [vmem:[#allocation5 + $0x18] sm:$0xff] %v99_v23 }
  0x36   :  { %63 = vsyncadd [#allocation4], 256  ;;  %s151_s0 = smov [#allocation5]  }
  0x37   :  { %s64_s21 = sshll.u32 %s151_s0, 4  ;;  %s65_s21 = int_to_ptr.vmem [resolvable:$true] %s64_s21 }
  0x38   :  { %s122_s22 = scalar_lea.vmem %s65_s21, 256  ;;  %s126_s23 = scalar_lea.vmem %s65_s21, 512 }
  0x39   :  { %p123_p8 = scmp.ne.s32.totalorder %s65_s21, %s122_s22  ;;  %p127_p9 = scmp.lt.s32.totalorder %s65_s21, %s65_s21 }
  0x3a   :  { %p128_p10 = scmp.lt.s32.totalorder %s126_s23, %s122_s22 }
  0x3c   :  { %p129_p11 = por %p128_p10, %p127_p9 }
  0x3e   :  { %p130_p12 = pnand %p129_p11, %p123_p8 }
  0x40   :  { %133 = shalt.err (!%p130_p12)
}
  0x41   :  { %s134_s26 = scalar_lea.hbm %s193_s1, 256 }
  0x42   :  { %p135_p13 = scmp.ne.s32.totalorder %s193_s1, %s134_s26  ;;  %p138_p0 = scmp.lt.u32.totalorder %s134_s26, %s193_s1 }
  0x44   :  { %p140_p1 = pnand %p138_p0, %p135_p13 }
  0x46   :  { %143 = shalt.err (!%p140_p1)
}
  0x47   :  { %70 = dma.vmem_to_hbm [thread:$0]  %s65_s21, 256, %s193_s1, [#allocation4], %s149_s17, %s149_s17, %s150_s18  }
  0x48   :  { %146 = dma.done.wait [#allocation4], 512  }
  0x49   :  { %147 = vsyncadd [#allocation4], 4294966784 }
  0x4a   :  { %74 = vsyncpa [#allocation3], 1 }
  0x4b   :  { %75 = vsyncpa [#allocation4], 1 }

</bundles_post_ra>
